<compile_context>
chip_gen: v6e
topology: v6e:2x2x1
jax: 0.10.0
libtpu: 0.0.40
codegen_flags: <defaults>
</compile_context>

<pallas_src>
import jax
import jax.numpy as jnp
from jax.experimental import pallas as pl
from jax.experimental.pallas import tpu as pltpu

LANE = 128
SUBLANE = 8


def _round_up(x, m):
    return ((x + m - 1) // m) * m


def rnn_seq_kernel(x_ref, h0_ref, w_di_ref, w_hi_ref, w_ho_ref,
                   h_out_ref, o_out_ref, h_acc):
    """One grid step = one timestep.  h_acc (VMEM scratch) carries the state.

    Biases are pre-folded into w_di / w_ho (affine augmentation), so the body
    is just three matmuls.
    """
    @pl.when(pl.program_id(0) == 0)
    def _():
        h_acc[...] = h0_ref[...]

    x_t = x_ref[0]                                           # (B_pad, D_pad)
    h_new = (
        jnp.dot(x_t, w_di_ref[...], preferred_element_type=jnp.float32)
        + jnp.dot(h_acc[...], w_hi_ref[...], preferred_element_type=jnp.float32)
    )
    h_acc[...] = h_new
    h_out_ref[0] = h_new.astype(h_out_ref.dtype)
    o_out_ref[0] = jnp.dot(
        h_new, w_ho_ref[...], preferred_element_type=jnp.float32
    ).astype(o_out_ref.dtype)


def prepare_params(w_i2h, b_i2h, w_h2o, b_h2o, data_size, batch_size):
    """One-time weight preprocessing (hoisted out of the forward path).

    cat(data, h) @ W_i2h.T == data @ W_i2h[:, :D].T + h @ W_i2h[:, D:].T.
    Weights are transposed to (in, out) layout for the MXU and zero-padded.
    Bias folding:
      * x carries a constant 1.0 in lane D (set in the forward wrapper);
        row D of w_di holds b_i2h -> the input bias is added by the matmul.
      * w_di[D, H] = 1.0 propagates that 1.0 into lane H of the hidden state
        (h lanes >= H are otherwise zero-padding); row H of w_ho holds b_h2o
        -> the output bias is added by the matmul.  The extra 1.0 lane is
        harmless in the recurrence (w_hi row H is zero) and is sliced off.
    """
    H, _ = w_i2h.shape
    D = data_size
    O = w_h2o.shape[0]
    # Reserve one spare lane past D (ones lane) and past H (carried ones lane).
    D_p = _round_up(D + 1, LANE)
    H_p = _round_up(H + 1, LANE)
    O_p = _round_up(O, LANE)
    B_p = _round_up(batch_size, SUBLANE)

    w_di = jnp.zeros((D_p, H_p), jnp.float32)
    w_di = w_di.at[:D, :H].set(jnp.transpose(w_i2h[:, :D]))
    w_di = w_di.at[D, :H].set(b_i2h)        # folded input bias
    w_di = w_di.at[D, H].set(1.0)           # carry the ones lane into h[:, H]

    w_hi = jnp.zeros((H_p, H_p), jnp.float32).at[:H, :H].set(
        jnp.transpose(w_i2h[:, D:]))

    w_ho = jnp.zeros((H_p, O_p), jnp.float32)
    w_ho = w_ho.at[:H, :O].set(jnp.transpose(w_h2o))
    w_ho = w_ho.at[H, :O].set(b_h2o)        # folded output bias

    return {
        "w_di": w_di, "w_hi": w_hi, "w_ho": w_ho,
        "dims": (D, H, O, D_p, H_p, O_p, B_p),
    }


def rnn_forward_sequence(data_seq, h0, params):
    """data_seq: (T, B, D); h0: (B, H)  ->  (hiddens (T,B,H), outputs (T,B,O)).

    Single pallas_call; grid over T with weights resident in VMEM.
    """
    T, B, D = data_seq.shape
    D_, H, O, D_p, H_p, O_p, B_p = params["dims"]
    assert D == D_ and h0.shape == (B, H)

    x_p = jnp.zeros((T, B_p, D_p), jnp.float32)
    x_p = x_p.at[:, :B, :D].set(data_seq)
    x_p = x_p.at[:, :, D].set(1.0)          # ones lane for the bias fold
    h0_p = jnp.zeros((B_p, H_p), jnp.float32).at[:B, :H].set(h0)

    const2d = lambda t: (0, 0)  # weights: same block every step (VMEM-resident)

    hiddens_p, outputs_p = pl.pallas_call(
        rnn_seq_kernel,
        grid=(T,),
        out_shape=(
            jax.ShapeDtypeStruct((T, B_p, H_p), jnp.float32),
            jax.ShapeDtypeStruct((T, B_p, O_p), jnp.float32),
        ),
        in_specs=[
            pl.BlockSpec((1, B_p, D_p), lambda t: (t, 0, 0)),   # x_t (streamed)
            pl.BlockSpec((B_p, H_p), const2d),                  # h0
            pl.BlockSpec((D_p, H_p), const2d),                  # w_di (+ b_i fold)
            pl.BlockSpec((H_p, H_p), const2d),                  # w_hi
            pl.BlockSpec((H_p, O_p), const2d),                  # w_ho (+ b_o fold)
        ],
        out_specs=(
            pl.BlockSpec((1, B_p, H_p), lambda t: (t, 0, 0)),
            pl.BlockSpec((1, B_p, O_p), lambda t: (t, 0, 0)),
        ),
        scratch_shapes=[pltpu.VMEM((B_p, H_p), jnp.float32)],   # recurrent state
        compiler_params=pltpu.CompilerParams(
            dimension_semantics=("arbitrary",),                 # recurrence: sequential
        ),
    )(x_p, h0_p, params["w_di"], params["w_hi"], params["w_ho"])

    return hiddens_p[:, :B, :H], outputs_p[:, :B, :O]


def rnn_forward(data, last_hidden, params):
    """Exact equivalent of the torch module's forward: one step."""
    hiddens, outputs = rnn_forward_sequence(data[None], last_hidden, params)
    return hiddens[0], outputs[0]


if __name__ == "__main__":
    # Shapes implied by the module: batch=10, hidden=20; small data/output dims.
    batch_size, data_size, hidden_size, output_size = 10, 30, 20, 10
    seq_len = 8

    key = jax.random.PRNGKey(0)
    k_data, k_wi, k_bi, k_wo, k_bo = jax.random.split(key, 5)

    data_seq = jax.random.normal(k_data, (seq_len, batch_size, data_size),
                                 dtype=jnp.float32)
    h0 = jnp.zeros((batch_size, hidden_size), dtype=jnp.float32)

    in_sz = data_size + hidden_size
    bound_i = 1.0 / (in_sz ** 0.5)
    bound_o = 1.0 / (hidden_size ** 0.5)
    w_i2h = jax.random.uniform(k_wi, (hidden_size, in_sz), jnp.float32, -bound_i, bound_i)
    b_i2h = jax.random.uniform(k_bi, (hidden_size,), jnp.float32, -bound_i, bound_i)
    w_h2o = jax.random.uniform(k_wo, (output_size, hidden_size), jnp.float32, -bound_o, bound_o)
    b_h2o = jax.random.uniform(k_bo, (output_size,), jnp.float32, -bound_o, bound_o)

    # One-time parameter preprocessing (hoisted out of the forward path).
    params = prepare_params(w_i2h, b_i2h, w_h2o, b_h2o, data_size, batch_size)

    # Jit the whole forward (padding + pallas_call) so input prep fuses.
    run_seq = jax.jit(lambda x, h: rnn_forward_sequence(x, h, params))
    hiddens, outputs = run_seq(data_seq, h0)
    jax.block_until_ready((hiddens, outputs))

    # Plain-JAX reference: identical math to the torch module, step by step.
    h = h0
    ref_h, ref_o = [], []
    for t in range(seq_len):
        cat = jnp.concatenate([data_seq[t], h], axis=1)
        h = cat @ w_i2h.T + b_i2h
        o = h @ w_h2o.T + b_h2o
        ref_h.append(h)
        ref_o.append(o)
    ref_h = jnp.stack(ref_h)
    ref_o = jnp.stack(ref_o)

    assert jnp.allclose(hiddens, ref_h, atol=1e-4, rtol=1e-4), "hidden mismatch"
    assert jnp.allclose(outputs, ref_o, atol=1e-4, rtol=1e-4), "output mismatch"

    # Also verify the single-step forward (exact module semantics).
    h1, o1 = rnn_forward(data_seq[0], h0, params)
    jax.block_until_ready((h1, o1))
    assert jnp.allclose(h1, ref_h[0], atol=1e-4, rtol=1e-4), "single-step hidden mismatch"
    assert jnp.allclose(o1, ref_o[0], atol=1e-4, rtol=1e-4), "single-step output mismatch"

    print("KERNEL_OK")
</pallas_src>

<mosaic_0001>
module attributes {stable_mosaic.version = 11 : i64} {
  func.func @rnn_seq_kernel(%arg0: i32, %arg1: memref<1x16x128xf32, #tpu.memory_space<vmem>>, %arg2: memref<16x128xf32, #tpu.memory_space<vmem>>, %arg3: memref<128x128xf32, #tpu.memory_space<vmem>>, %arg4: memref<128x128xf32, #tpu.memory_space<vmem>>, %arg5: memref<128x128xf32, #tpu.memory_space<vmem>>, %arg6: memref<1x16x128xf32, #tpu.memory_space<vmem>>, %arg7: memref<1x16x128xf32, #tpu.memory_space<vmem>>, %arg8: memref<16x128xf32, #tpu.memory_space<vmem>>) attributes {dimension_semantics = [#tpu.dimension_semantics<arbitrary>], iteration_bounds = array<i64: 8>, scalar_prefetch = 0 : i64, scratch_operands = 1 : i64, tpu.core_type = #tpu.core_type<tc>, window_params = [{transform_indices = @transform_0, window_bounds = array<i64: 1, 16, 128>}, {pipeline_mode = #tpu.pipeline_mode<synchronous>, transform_indices = @transform_1, window_bounds = array<i64: 16, 128>}, {pipeline_mode = #tpu.pipeline_mode<synchronous>, transform_indices = @transform_2, window_bounds = array<i64: 128, 128>}, {pipeline_mode = #tpu.pipeline_mode<synchronous>, transform_indices = @transform_3, window_bounds = array<i64: 128, 128>}, {pipeline_mode = #tpu.pipeline_mode<synchronous>, transform_indices = @transform_4, window_bounds = array<i64: 128, 128>}, {transform_indices = @transform_5, window_bounds = array<i64: 1, 16, 128>}, {transform_indices = @transform_6, window_bounds = array<i64: 1, 16, 128>}]} {
    %c0_i32 = arith.constant 0 : i32
    %0 = arith.cmpi eq, %arg0, %c0_i32 : i32
    %1 = arith.extui %0 : i1 to i32
    %c0_i32_0 = arith.constant 0 : i32
    %2 = arith.cmpi ne, %1, %c0_i32_0 : i32
    scf.if %2 {
      %c0_21 = arith.constant 0 : index
      %c0_22 = arith.constant 0 : index
      %20 = vector.load %arg2[%c0_21, %c0_22] : memref<16x128xf32, #tpu.memory_space<vmem>>, vector<16x128xf32>
      %c0_23 = arith.constant 0 : index
      %c0_24 = arith.constant 0 : index
      %21 = vector.load %arg8[%c0_23, %c0_24] : memref<16x128xf32, #tpu.memory_space<vmem>>, vector<16x128xf32>
      tpu.vector_store %arg8[%c0_23, %c0_24], %20 {strides = array<i32>} : memref<16x128xf32, #tpu.memory_space<vmem>>, vector<16x128xf32>,
    } else {
    }
    %c0 = arith.constant 0 : index
    %c0_1 = arith.constant 0 : index
    %c0_2 = arith.constant 0 : index
    %3 = vector.load %arg1[%c0, %c0_1, %c0_2] : memref<1x16x128xf32, #tpu.memory_space<vmem>>, vector<1x16x128xf32>
    %4 = vector.shape_cast %3 : vector<1x16x128xf32> to vector<16x128xf32>
    %c0_3 = arith.constant 0 : index
    %c0_4 = arith.constant 0 : index
    %5 = vector.load %arg3[%c0_3, %c0_4] : memref<128x128xf32, #tpu.memory_space<vmem>>, vector<128x128xf32>
    %cst = arith.constant dense<0.000000e+00> : vector<16x128xf32>
    %6 = tpu.matmul %4, %5, %cst {dimension_numbers = #tpu.dot_dimension_numbers<[1], [0], [0], [1], [0, 0, 1, 1], [], []>} : vector<16x128xf32>, vector<128x128xf32>, vector<16x128xf32> -> vector<16x128xf32>
    %c0_5 = arith.constant 0 : index
    %c0_6 = arith.constant 0 : index
    %7 = vector.load %arg8[%c0_5, %c0_6] : memref<16x128xf32, #tpu.memory_space<vmem>>, vector<16x128xf32>
    %c0_7 = arith.constant 0 : index
    %c0_8 = arith.constant 0 : index
    %8 = vector.load %arg4[%c0_7, %c0_8] : memref<128x128xf32, #tpu.memory_space<vmem>>, vector<128x128xf32>
    %cst_9 = arith.constant dense<0.000000e+00> : vector<16x128xf32>
    %9 = tpu.matmul %7, %8, %cst_9 {dimension_numbers = #tpu.dot_dimension_numbers<[1], [0], [0], [1], [0, 0, 1, 1], [], []>} : vector<16x128xf32>, vector<128x128xf32>, vector<16x128xf32> -> vector<16x128xf32>
    %10 = arith.addf %6, %9 : vector<16x128xf32>
    %c0_10 = arith.constant 0 : index
    %c0_11 = arith.constant 0 : index
    %11 = vector.load %arg8[%c0_10, %c0_11] : memref<16x128xf32, #tpu.memory_space<vmem>>, vector<16x128xf32>
    tpu.vector_store %arg8[%c0_10, %c0_11], %10 {strides = array<i32>} : memref<16x128xf32, #tpu.memory_space<vmem>>, vector<16x128xf32>,
    %c0_12 = arith.constant 0 : index
    %c0_13 = arith.constant 0 : index
    %c0_14 = arith.constant 0 : index
    %12 = vector.load %arg6[%c0_12, %c0_13, %c0_14] : memref<1x16x128xf32, #tpu.memory_space<vmem>>, vector<1x16x128xf32>
    %13 = vector.shape_cast %12 : vector<1x16x128xf32> to vector<16x128xf32>
    %14 = vector.shape_cast %10 : vector<16x128xf32> to vector<1x16x128xf32>
    tpu.vector_store %arg6[%c0_12, %c0_13, %c0_14], %14 {strides = array<i32>} : memref<1x16x128xf32, #tpu.memory_space<vmem>>, vector<1x16x128xf32>,
    %c0_15 = arith.constant 0 : index
    %c0_16 = arith.constant 0 : index
    %15 = vector.load %arg5[%c0_15, %c0_16] : memref<128x128xf32, #tpu.memory_space<vmem>>, vector<128x128xf32>
    %cst_17 = arith.constant dense<0.000000e+00> : vector<16x128xf32>
    %16 = tpu.matmul %10, %15, %cst_17 {dimension_numbers = #tpu.dot_dimension_numbers<[1], [0], [0], [1], [0, 0, 1, 1], [], []>} : vector<16x128xf32>, vector<128x128xf32>, vector<16x128xf32> -> vector<16x128xf32>
    %c0_18 = arith.constant 0 : index
    %c0_19 = arith.constant 0 : index
    %c0_20 = arith.constant 0 : index
    %17 = vector.load %arg7[%c0_18, %c0_19, %c0_20] : memref<1x16x128xf32, #tpu.memory_space<vmem>>, vector<1x16x128xf32>
    %18 = vector.shape_cast %17 : vector<1x16x128xf32> to vector<16x128xf32>
    %19 = vector.shape_cast %16 : vector<16x128xf32> to vector<1x16x128xf32>
    tpu.vector_store %arg7[%c0_18, %c0_19, %c0_20], %19 {strides = array<i32>} : memref<1x16x128xf32, #tpu.memory_space<vmem>>, vector<1x16x128xf32>,
    return
  }
  func.func @transform_0(%arg0: i32) -> (i32, i32, i32) {
    %c0_i32 = arith.constant 0 : i32
    %c0_i32_0 = arith.constant 0 : i32
    %c0_i32_1 = arith.constant 0 : i32
    return %arg0, %c0_i32, %c0_i32_0 : i32, i32, i32
  }
  func.func @transform_1(%arg0: i32) -> (i32, i32) {
    %c0_i32 = arith.constant 0 : i32
    %c0_i32_0 = arith.constant 0 : i32
    %c0_i32_1 = arith.constant 0 : i32
    return %c0_i32, %c0_i32_0 : i32, i32
  }
  func.func @transform_2(%arg0: i32) -> (i32, i32) {
    %c0_i32 = arith.constant 0 : i32
    %c0_i32_0 = arith.constant 0 : i32
    %c0_i32_1 = arith.constant 0 : i32
    return %c0_i32, %c0_i32_0 : i32, i32
  }
  func.func @transform_3(%arg0: i32) -> (i32, i32) {
    %c0_i32 = arith.constant 0 : i32
    %c0_i32_0 = arith.constant 0 : i32
    %c0_i32_1 = arith.constant 0 : i32
    return %c0_i32, %c0_i32_0 : i32, i32
  }
  func.func @transform_4(%arg0: i32) -> (i32, i32) {
    %c0_i32 = arith.constant 0 : i32
    %c0_i32_0 = arith.constant 0 : i32
    %c0_i32_1 = arith.constant 0 : i32
    return %c0_i32, %c0_i32_0 : i32, i32
  }
  func.func @transform_5(%arg0: i32) -> (i32, i32, i32) {
    %c0_i32 = arith.constant 0 : i32
    %c0_i32_0 = arith.constant 0 : i32
    %c0_i32_1 = arith.constant 0 : i32
    return %arg0, %c0_i32, %c0_i32_0 : i32, i32, i32
  }
  func.func @transform_6(%arg0: i32) -> (i32, i32, i32) {
    %c0_i32 = arith.constant 0 : i32
    %c0_i32_0 = arith.constant 0 : i32
    %c0_i32_1 = arith.constant 0 : i32
    return %arg0, %c0_i32, %c0_i32_0 : i32, i32, i32
  }
}

</mosaic_0001>

<bundles_post_ra>
// kernel: _lambda_.1
= control target key start
LH: loop header
LB: loop body
LE: loop exit
PB: predicated region body
PF: predicated region fallthrough
CT: control target
= control target key end

     0   :  { %s871_s21 = smov 0   ;;  %s1053_s0 = inlined_call_operand.vmem [shape: f32[8,16,128], index: 0, kind: input, shape index: {}]   ;;  %s1054_s1 = inlined_call_operand.vmem [shape: f32[16,128], index: 1, kind: input, shape index: {}]   ;;  %s1055_s2 = inlined_call_operand.vmem [shape: f32[128,128], index: 2, kind: input, shape index: {}]   ;;  %s1056_s3 = inlined_call_operand.vmem [shape: f32[128,128], index: 3, kind: input, shape index: {}]   ;;  %s1057_s4 = inlined_call_operand.vmem [shape: f32[128,128], index: 4, kind: input, shape index: {}]   ;;  %s1058_s5 = inlined_call_operand.vmem [shape: f32[8,16,128], index: 5, kind: output, shape index: {0}]   ;;  %s1059_s6 = inlined_call_operand.vmem [shape: f32[8,16,128], index: 6, kind: output, shape index: {1}]  }
   0x1 LB: > { %s644_s22 = sadd.s32 4294967295, %s834_s21   ;;  %p648_p0 = scmp.ge.s32.totalorder %s834_s21, 1  ;;  %s834_s21 = sphi %s871_s21, %s17_s21  }
   0x2   : > { %p215_p1 = scmp.lt.s32.totalorder %s834_s21, 9 }
   0x4   : > { %p216_p2 = pnand %p648_p0, %p215_p1 }
   0x5   : > { %p250_p3 = scmp.lt.s32.totalorder (!%p216_p2), %s644_s22, 7  ;;  %p655_p4 = scmp.ne.s32.totalorder (!%p216_p2), %s644_s22, 0 }
   0x6   : > { %219 = sbr.rel (%p216_p2) target bundleno = 448 (0x1c0), region = 40 }
   0xb   : > { %s251_s23 = scalar_select %p250_p3, %s644_s22, 7 }
   0xc   : > { %268 = sbr.rel (%p655_p4) target bundleno = 19 (0x13), region = 44 }
   0xd   : > { %s658_s24 = sshll.u32 %s251_s23, 4 }
   0xe   : > { %s882_s27 = scalar_lea.vmem %s1053_s0, %s658_s24  ;;  %s887_s30 = scalar_lea.vmem %s1058_s5, %s658_s24 }
   0xf   : > { %s892_s9 = scalar_lea.vmem %s1059_s6, %s658_s24 }
  0x11   : > { %v269_v0 = vld [vmem:[%s1054_s1] sm:$0xff]  ;;  %v270_v1 = vld [vmem:[%s1054_s1 + $0x8] sm:$0xff] }
  0x12   : > { %271 = vst [vmem:[#allocation2] sm:$0xff] %v269_v0  ;;  %272 = vst [vmem:[#allocation2 + $0x8] sm:$0xff] %v270_v1 }
  0x13 PF: > { %v308_v2 = vld [vmem:[%s1056_s3 + $0x78] sm:$0xff]  ;;  %v307_v4 = vld [vmem:[%s1056_s3 + $0x70] sm:$0xff]  ;;  %v306_v6 = vld [vmem:[%s1056_s3 + $0x68] sm:$0xff] }
  0x14   : > { %v290_v3 = vld [vmem:[%s1055_s2 + $0x78] sm:$0xff]  ;;  %715 = vmatprep.subr.mxu0 %v308_v2  ;;  %v289_v5 = vld [vmem:[%s1055_s2 + $0x70] sm:$0xff]  ;;  %v288_v7 = vld [vmem:[%s1055_s2 + $0x68] sm:$0xff] }
  0x15   : > { %750 = vmatprep.subr.mxu1 %v290_v3  ;;  %716 = vmatpush3.msra.mxu0 %v308_v2  ;;  %v305_v8 = vld [vmem:[%s1056_s3 + $0x60] sm:$0xff]  ;;  %v304_v10 = vld [vmem:[%s1056_s3 + $0x58] sm:$0xff]  ;;  %v303_v12 = vld [vmem:[%s1056_s3 + $0x50] sm:$0xff] }
  0x16   : > { %751 = vmatpush3.msra.mxu1 %v290_v3  ;;  %717 = vmatprep.subr.mxu0 %v307_v4  ;;  %v287_v9 = vld [vmem:[%s1055_s2 + $0x60] sm:$0xff]  ;;  %v286_v11 = vld [vmem:[%s1055_s2 + $0x58] sm:$0xff]  ;;  %v285_v13 = vld [vmem:[%s1055_s2 + $0x50] sm:$0xff] }
  0x17   : > { %752 = vmatprep.subr.mxu1 %v289_v5  ;;  %718 = vmatpush3.msra.mxu0 %v307_v4  ;;  %v302_v14 = vld [vmem:[%s1056_s3 + $0x48] sm:$0xff]  ;;  %v301_v16 = vld [vmem:[%s1056_s3 + $0x40] sm:$0xff]  ;;  %v300_v18 = vld [vmem:[%s1056_s3 + $0x38] sm:$0xff] }
  0x18   : > { %753 = vmatpush3.msra.mxu1 %v289_v5  ;;  %719 = vmatprep.subr.mxu0 %v306_v6  ;;  %v284_v15 = vld [vmem:[%s1055_s2 + $0x48] sm:$0xff]  ;;  %v283_v17 = vld [vmem:[%s1055_s2 + $0x40] sm:$0xff]  ;;  %v282_v19 = vld [vmem:[%s1055_s2 + $0x38] sm:$0xff] }
  0x19   : > { %754 = vmatprep.subr.mxu1 %v288_v7  ;;  %720 = vmatpush3.msra.mxu0 %v306_v6  ;;  %v299_v20 = vld [vmem:[%s1056_s3 + $0x30] sm:$0xff]  ;;  %v298_v22 = vld [vmem:[%s1056_s3 + $0x28] sm:$0xff]  ;;  %v297_v24 = vld [vmem:[%s1056_s3 + $0x20] sm:$0xff] }
  0x1a   : > { %755 = vmatpush3.msra.mxu1 %v288_v7  ;;  %721 = vmatprep.subr.mxu0 %v305_v8  ;;  %v281_v21 = vld [vmem:[%s1055_s2 + $0x30] sm:$0xff]  ;;  %v280_v23 = vld [vmem:[%s1055_s2 + $0x28] sm:$0xff]  ;;  %v279_v25 = vld [vmem:[%s1055_s2 + $0x20] sm:$0xff] }
  0x1b   : > { %756 = vmatprep.subr.mxu1 %v287_v9  ;;  %722 = vmatpush3.msra.mxu0 %v305_v8  ;;  %v296_v26 = vld [vmem:[%s1056_s3 + $0x18] sm:$0xff]  ;;  %v295_v28 = vld [vmem:[%s1056_s3 + $0x10] sm:$0xff]  ;;  %v294_v30 = vld [vmem:[%s1056_s3 + $0x8] sm:$0xff] }
  0x1c   : > { %757 = vmatpush3.msra.mxu1 %v287_v9  ;;  %723 = vmatprep.subr.mxu0 %v304_v10  ;;  %v278_v27 = vld [vmem:[%s1055_s2 + $0x18] sm:$0xff]  ;;  %v277_v29 = vld [vmem:[%s1055_s2 + $0x10] sm:$0xff]  ;;  %v276_v31 = vld [vmem:[%s1055_s2 + $0x8] sm:$0xff] }
  0x1d   : > { %758 = vmatprep.subr.mxu1 %v286_v11  ;;  %724 = vmatpush3.msra.mxu0 %v304_v10  ;;  %v293_v32 = vld [vmem:[%s1056_s3] sm:$0xff]  ;;  %v292_v36 = vld [vmem:[#allocation2 + $0x8] sm:$0xff]  ;;  %v478_v38 = vld [vmem:[%s1057_s4 + $0x78] sm:$0xff] }
  0x1e   : > { %759 = vmatpush3.msra.mxu1 %v286_v11  ;;  %725 = vmatprep.subr.mxu0 %v303_v12  ;;  %v275_v33 = vld [vmem:[%s1055_s2] sm:$0xff]  ;;  %v274_v37 = vld [vmem:[%s882_s27 + $0x8] sm:$0xff]  ;;  %v477_v39 = vld [vmem:[%s1057_s4 + $0x70] sm:$0xff] }
  0x1f   : > { %760 = vmatprep.subr.mxu1 %v285_v13  ;;  %726 = vmatpush3.msra.mxu0 %v303_v12  ;;  %v291_v34 = vld [vmem:[#allocation2] sm:$0xff]  ;;  %v476_v40 = vld [vmem:[%s1057_s4 + $0x68] sm:$0xff]  ;;  %v474_v42 = vld [vmem:[%s1057_s4 + $0x58] sm:$0xff] }
  0x20   : > { %761 = vmatpush3.msra.mxu1 %v285_v13  ;;  %727 = vmatprep.subr.mxu0 %v302_v14  ;;  %v273_v35 = vld [vmem:[%s882_s27] sm:$0xff]  ;;  %v473_v43 = vld [vmem:[%s1057_s4 + $0x50] sm:$0xff]  ;;  %v472_v44 = vld [vmem:[%s1057_s4 + $0x48] sm:$0xff] }
  0x21   : > { %762 = vmatprep.subr.mxu1 %v284_v15  ;;  %728 = vmatpush3.msra.mxu0 %v302_v14  ;;  %v475_v41 = vld [vmem:[%s1057_s4 + $0x60] sm:$0xff]  ;;  %v470_v46 = vld [vmem:[%s1057_s4 + $0x38] sm:$0xff]  ;;  %v469_v47 = vld [vmem:[%s1057_s4 + $0x30] sm:$0xff] }
  0x22   : > { %763 = vmatpush3.msra.mxu1 %v284_v15  ;;  %729 = vmatprep.subr.mxu0 %v301_v16  ;;  %v471_v45 = vld [vmem:[%s1057_s4 + $0x40] sm:$0xff]  ;;  %v468_v48 = vld [vmem:[%s1057_s4 + $0x28] sm:$0xff]  ;;  %v466_v50 = vld [vmem:[%s1057_s4 + $0x18] sm:$0xff] }
  0x23   : > { %764 = vmatprep.subr.mxu1 %v283_v17  ;;  %730 = vmatpush3.msra.mxu0 %v301_v16  ;;  %v467_v49 = vld [vmem:[%s1057_s4 + $0x20] sm:$0xff]  ;;  %v465_v51 = vld [vmem:[%s1057_s4 + $0x10] sm:$0xff]  ;;  %v464_v52 = vld [vmem:[%s1057_s4 + $0x8] sm:$0xff] }
  0x24   : > { %765 = vmatpush3.msra.mxu1 %v283_v17  ;;  %731 = vmatprep.subr.mxu0 %v300_v18  ;;  %v463_v53 = vld [vmem:[%s1057_s4] sm:$0xff] }
  0x25   : > { %766 = vmatprep.subr.mxu1 %v282_v19  ;;  %732 = vmatpush3.msra.mxu0 %v300_v18 }
  0x26   : > { %767 = vmatpush3.msra.mxu1 %v282_v19  ;;  %733 = vmatprep.subr.mxu0 %v299_v20 }
  0x27   : > { %768 = vmatprep.subr.mxu1 %v281_v21  ;;  %734 = vmatpush3.msra.mxu0 %v299_v20 }
  0x28   : > { %769 = vmatpush3.msra.mxu1 %v281_v21  ;;  %735 = vmatprep.subr.mxu0 %v298_v22 }
  0x29   : > { %770 = vmatprep.subr.mxu1 %v280_v23  ;;  %736 = vmatpush3.msra.mxu0 %v298_v22 }
  0x2a   : > { %771 = vmatpush3.msra.mxu1 %v280_v23  ;;  %737 = vmatprep.subr.mxu0 %v297_v24 }
  0x2b   : > { %772 = vmatprep.subr.mxu1 %v279_v25  ;;  %738 = vmatpush3.msra.mxu0 %v297_v24 }
  0x2c   : > { %773 = vmatpush3.msra.mxu1 %v279_v25  ;;  %739 = vmatprep.subr.mxu0 %v296_v26 }
  0x2d   : > { %774 = vmatprep.subr.mxu1 %v278_v27  ;;  %740 = vmatpush3.msra.mxu0 %v296_v26 }
  0x2e   : > { %775 = vmatpush3.msra.mxu1 %v278_v27  ;;  %741 = vmatprep.subr.mxu0 %v295_v28 }
  0x2f   : > { %776 = vmatprep.subr.mxu1 %v277_v29  ;;  %742 = vmatpush3.msra.mxu0 %v295_v28 }
  0x30   : > { %777 = vmatpush3.msra.mxu1 %v277_v29  ;;  %743 = vmatprep.subr.mxu0 %v294_v30 }
  0x31   : > { %778 = vmatprep.subr.mxu1 %v276_v31  ;;  %744 = vmatpush3.msra.mxu0 %v294_v30 }
  0x32   : > { %779 = vmatpush3.msra.mxu1 %v276_v31  ;;  %745 = vmatprep.subr.mxu0 %v293_v32 }
  0x33   : > { %780 = vmatprep.subr.mxu1 %v275_v33  ;;  %746 = vmatpush3.msra.mxu0 %v293_v32 }
  0x34   : > { %747 = vmatprep.mubr.f32.mxu0 %v291_v34  ;;  %781 = vmatpush3.msra.mxu1 %v275_v33 }
  0x35   : > { %782 = vmatprep.mubr.f32.mxu1 %v273_v35  ;;  %748 = vmatmul.mubr.f32.vlgmr.msra.gmra.mxu0 %v292_v36 }
  0x36   : > { %783 = vmatmul.mubr.f32.vlgmr.msra.gmra.mxu1 %v274_v37  ;;  %785 = vmatprep.subr.mxu0 %v478_v38 }
  0x37   : > { %786 = vmatpush3.msra.mxu0 %v478_v38 }
  0x38   : > { %787 = vmatprep.subr.mxu0 %v477_v39 }
  0x39   : > { %788 = vmatpush3.msra.mxu0 %v477_v39 }
  0x3a   : > { %789 = vmatprep.subr.mxu0 %v476_v40 }
  0x3b   : > { %790 = vmatpush3.msra.mxu0 %v476_v40 }
  0x3c   : > { %791 = vmatprep.subr.mxu0 %v475_v41 }
  0x3d   : > { %792 = vmatpush3.msra.mxu0 %v475_v41 }
  0x3e   : > { %793 = vmatprep.subr.mxu0 %v474_v42 }
  0x3f   : > { %794 = vmatpush3.msra.mxu0 %v474_v42 }
  0x40   : > { %795 = vmatprep.subr.mxu0 %v473_v43 }
  0x41   : > { %796 = vmatpush3.msra.mxu0 %v473_v43 }
  0x42   : > { %797 = vmatprep.subr.mxu0 %v472_v44 }
  0x43   : > { %798 = vmatpush3.msra.mxu0 %v472_v44 }
  0x44   : > { %799 = vmatprep.subr.mxu0 %v471_v45 }
  0x45   : > { %800 = vmatpush3.msra.mxu0 %v471_v45 }
  0x46   : > { %801 = vmatprep.subr.mxu0 %v470_v46 }
  0x47   : > { %802 = vmatpush3.msra.mxu0 %v470_v46 }
  0x48   : > { %803 = vmatprep.subr.mxu0 %v469_v47 }
  0x49   : > { %804 = vmatpush3.msra.mxu0 %v469_v47 }
  0x4a   : > { %805 = vmatprep.subr.mxu0 %v468_v48 }
  0x4b   : > { %806 = vmatpush3.msra.mxu0 %v468_v48 }
  0x4c   : > { %807 = vmatprep.subr.mxu0 %v467_v49 }
  0x4d   : > { %808 = vmatpush3.msra.mxu0 %v467_v49 }
  0x4e   : > { %809 = vmatprep.subr.mxu0 %v466_v50 }
  0x4f   : > { %810 = vmatpush3.msra.mxu0 %v466_v50 }
  0x50   : > { %811 = vmatprep.subr.mxu0 %v465_v51 }
  0x51   : > { %812 = vmatpush3.msra.mxu0 %v465_v51 }
  0x52   : > { %813 = vmatprep.subr.mxu0 %v464_v52 }
  0x53   : > { %814 = vmatpush3.msra.mxu0 %v464_v52 }
  0x54   : > { %815 = vmatprep.subr.mxu0 %v463_v53 }
  0x55   : > { %816 = vmatpush3.msra.mxu0 %v463_v53 }
  0xf5   : > { %v749_v54 = vpop.f32.mrf.mxu0 }
  0xf6   : > { %v784_v55 = vpop.f32.mrf.mxu1 }
  0xf7   : > { %v456_v56 = vadd.f32 %v784_v55, %v749_v54  ;;  %v375_v57 = vpop.f32.mrf.mxu0 }
  0xf8   : > { %v450_v58 = vpop.f32.mrf.mxu1 }
  0xf9   : > { %460 = vst [vmem:[#allocation2 + $0x8] sm:$0xff] %v456_v56  ;;  %462 = vst [vmem:[%s887_s30 + $0x8] sm:$0xff] %v456_v56  ;;  %v451_v59 = vadd.f32 %v450_v58, %v375_v57 }
  0xfb   : > { %459 = vst [vmem:[#allocation2] sm:$0xff] %v451_v59  ;;  %461 = vst [vmem:[%s887_s30] sm:$0xff] %v451_v59  ;;  %817 = vmatprep.mubr.f32.mxu0 %v451_v59 }
  0xfc   : > { %818 = vmatmul.mubr.f32.vlgmr.msra.gmra.mxu0 %v456_v56 }
 0x1bc   : > { %v819_v60 = vpop.f32.mrf.mxu0 }
 0x1bd   : > { %555 = vst [vmem:[%s892_s9 + $0x8] sm:$0xff] %v819_v60 }
 0x1be   : > { %v545_v61 = vpop.f32.mrf.mxu0 }
 0x1bf   : > { %554 = vst [vmem:[%s892_s9] sm:$0xff] %v545_v61 }
 0x1c0 PF: > { %s17_s21 = sadd.s32 1, %s834_s21  }
 0x1c1   : > { %p14_p5 = scmp.ge.s32.totalorder %s17_s21, 10  }
 0x1c3   :  { %16 = sbr.rel (!%p14_p5) target bundleno = 1 (0x1), region = 86 }

</bundles_post_ra>
